<compile_context>
chip_gen: v7x
topology: tpu7x:2x2x1
jax: 0.10.0
libtpu: 0.0.40
codegen_flags: <defaults>
</compile_context>

<pallas_src>
import functools

import jax
import jax.numpy as jnp
from jax.experimental import pallas as pl
from jax.experimental.pallas import tpu as pltpu

MEAN = 0.1307
SIGMA = 0.3081

_LANE = 128        # lane width (last dim)
_SUBLANE = 8       # f32 sublane count (second-to-last dim)
_BATCH_TILE = 256  # batch tile once batch scales (256 matches v6e/v7x MXU; 128 on v5e)


def _round_up(x, m):
    return ((x + m - 1) // m) * m


# ---------------------------------------------------------------------------
# Fused kernel: h = x; for each layer: h = h @ W + b (ReLU between layers only)
# bf16 MXU operands, f32 accumulation.
# ---------------------------------------------------------------------------
def _fused_mlp_kernel(*refs, n_layers):
    x_ref = refs[0]
    o_ref = refs[-1]
    h = x_ref[...]                                   # bf16 activation tile
    for i in range(n_layers):
        w_ref = refs[1 + 2 * i]                      # bf16 weights
        b_ref = refs[2 + 2 * i]                      # f32 bias
        acc = jnp.dot(h, w_ref[...], preferred_element_type=jnp.float32) + b_ref[...]
        if i + 1 < n_layers:                         # ReLU between layers only
            h = jnp.maximum(acc, 0.0).astype(jnp.bfloat16)
        else:
            h = acc                                  # final layer stays f32
    o_ref[...] = h.astype(o_ref.dtype)


def fused_mlp(x_pad, padded_params, *, tm):
    """x_pad: (Bp, K0p) bf16; padded_params: list of (W (Kp, Np) bf16, b (1, Np) f32)."""
    Bp, K0p = x_pad.shape
    n_layers = len(padded_params)
    Np_out = padded_params[-1][0].shape[1]
    assert Bp % tm == 0

    flat_args = []
    in_specs = [pl.BlockSpec((tm, K0p), lambda i: (i, 0))]
    for w, b in padded_params:
        flat_args += [w, b]
        # Weights/biases: same block every grid step -> stay VMEM-resident.
        in_specs += [pl.BlockSpec(w.shape, lambda i: (0, 0)),
                     pl.BlockSpec(b.shape, lambda i: (0, 0))]

    kernel = functools.partial(_fused_mlp_kernel, n_layers=n_layers)
    return pl.pallas_call(
        kernel,
        out_shape=jax.ShapeDtypeStruct((Bp, Np_out), jnp.float32),
        grid=(Bp // tm,),
        in_specs=in_specs,
        out_specs=pl.BlockSpec((tm, Np_out), lambda i: (i, 0)),
        compiler_params=pltpu.CompilerParams(
            dimension_semantics=("parallel",)),      # megacore batch split on v7x
    )(x_pad, *flat_args)


# ---------------------------------------------------------------------------
# Parameter init (nn.Linear-style) + one-time prep (fold norm + pad + bf16)
# ---------------------------------------------------------------------------
def init_params(key, input_size, fc_layers):
    """nn.Linear-style init; W stored transposed as (in, out), b as (1, out)."""
    params = []
    prev = input_size * input_size
    for fc_size in fc_layers:
        key, kw, kb = jax.random.split(key, 3)
        bound = 1.0 / jnp.sqrt(prev)
        w = jax.random.uniform(kw, (prev, fc_size), jnp.float32, -bound, bound)
        b = jax.random.uniform(kb, (1, fc_size), jnp.float32, -bound, bound)
        params.append((w, b))
        prev = fc_size
    return params


def prepare_params(params):
    """One-time setup: fold normalization into layer 0 (exact, in f32),
    zero-pad every feature dim to a multiple of 128 lanes, store W as bf16."""
    prepared = []
    for i, (w, b) in enumerate(params):
        w = w.astype(jnp.float32)
        b = b.astype(jnp.float32)
        if i == 0:
            # ((x-MEAN)/SIGMA) @ W + b == x @ (W/SIGMA) + (b - (MEAN/SIGMA)*sum_k W[k,:])
            b = b - (MEAN / SIGMA) * jnp.sum(w, axis=0, keepdims=True)
            w = w * (1.0 / SIGMA)
        K, N = w.shape
        Kp, Np = _round_up(K, _LANE), _round_up(N, _LANE)
        w_p = jnp.pad(w, ((0, Kp - K), (0, Np - N))).astype(jnp.bfloat16)
        b_p = jnp.pad(b, ((0, 0), (0, Np - N)))      # bias stays f32
        prepared.append((w_p, b_p))
    return prepared


# ---------------------------------------------------------------------------
# Forward
# ---------------------------------------------------------------------------
def fully_connected_forward(x_nchw, prepared_params, out_features):
    B = x_nchw.shape[0]
    x2d = x_nchw.reshape(B, -1)                       # Flatten (glue)
    F = x2d.shape[1]
    K0p = prepared_params[0][0].shape[0]              # lane-dense in-features

    Bp8 = _round_up(B, _SUBLANE)
    tm = Bp8 if Bp8 <= _BATCH_TILE else _BATCH_TILE   # single block for small batch
    Bp = _round_up(B, tm)

    x_pad = jnp.pad(x2d, ((0, Bp - B), (0, K0p - F))).astype(jnp.bfloat16)
    out_pad = fused_mlp(x_pad, prepared_params, tm=tm)   # one Pallas launch
    return out_pad[:B, :out_features]


def reference_forward(x_nchw, params):
    B = x_nchw.shape[0]
    h = ((x_nchw.astype(jnp.float32) - MEAN) / SIGMA).reshape(B, -1)
    n_layers = len(params)
    for i, (w, b) in enumerate(params):
        h = h @ w + b[0]
        if i + 1 < n_layers:
            h = jnp.maximum(h, 0.0)
    return h


if __name__ == "__main__":
    key = jax.random.PRNGKey(0)
    k_x, k_p = jax.random.split(key)

    batch, input_size = 2, 16
    fc_layers = [32, 32, 10]

    # NCHW input, single channel (MNIST-style)
    x = jax.random.uniform(k_x, (batch, 1, input_size, input_size), jnp.float32)
    params = init_params(k_p, input_size, fc_layers)
    prepared = prepare_params(params)                 # executed once at setup

    forward = jax.jit(
        lambda xb: fully_connected_forward(xb, prepared, fc_layers[-1]))

    out = forward(x)
    out = jax.block_until_ready(out)

    ref = reference_forward(x, params)
    assert out.shape == (batch, fc_layers[-1])
    # bf16 MXU operands with f32 accumulation -> 2e-2 tolerance vs f32 reference.
    assert jnp.allclose(out, ref, atol=2e-2, rtol=2e-2), (
        f"max abs diff {jnp.max(jnp.abs(out - ref)):.4e}")

    print("KERNEL_OK")
</pallas_src>

<mosaic_0001>
module attributes {stable_mosaic.version = 11 : i64} {
  func.func @_fused_mlp_kernel(%arg0: i32, %arg1: memref<8x256xbf16, #tpu.memory_space<vmem>>, %arg2: memref<256x128xbf16, #tpu.memory_space<vmem>>, %arg3: memref<1x128xf32, #tpu.memory_space<vmem>>, %arg4: memref<128x128xbf16, #tpu.memory_space<vmem>>, %arg5: memref<1x128xf32, #tpu.memory_space<vmem>>, %arg6: memref<128x128xbf16, #tpu.memory_space<vmem>>, %arg7: memref<1x128xf32, #tpu.memory_space<vmem>>, %arg8: memref<8x128xf32, #tpu.memory_space<vmem>>) attributes {dimension_semantics = [#tpu.dimension_semantics<parallel>], iteration_bounds = array<i64: 1>, scalar_prefetch = 0 : i64, scratch_operands = 0 : i64, tpu.core_type = #tpu.core_type<tc>, window_params = [{transform_indices = @transform_0, window_bounds = array<i64: 8, 256>}, {pipeline_mode = #tpu.pipeline_mode<synchronous>, transform_indices = @transform_1, window_bounds = array<i64: 256, 128>}, {pipeline_mode = #tpu.pipeline_mode<synchronous>, transform_indices = @transform_2, window_bounds = array<i64: 1, 128>}, {pipeline_mode = #tpu.pipeline_mode<synchronous>, transform_indices = @transform_3, window_bounds = array<i64: 128, 128>}, {pipeline_mode = #tpu.pipeline_mode<synchronous>, transform_indices = @transform_4, window_bounds = array<i64: 1, 128>}, {pipeline_mode = #tpu.pipeline_mode<synchronous>, transform_indices = @transform_5, window_bounds = array<i64: 128, 128>}, {pipeline_mode = #tpu.pipeline_mode<synchronous>, transform_indices = @transform_6, window_bounds = array<i64: 1, 128>}, {transform_indices = @transform_7, window_bounds = array<i64: 8, 128>}]} {
    %c0 = arith.constant 0 : index
    %c0_0 = arith.constant 0 : index
    %0 = vector.load %arg1[%c0, %c0_0] : memref<8x256xbf16, #tpu.memory_space<vmem>>, vector<8x256xbf16>
    %c0_1 = arith.constant 0 : index
    %c0_2 = arith.constant 0 : index
    %1 = vector.load %arg2[%c0_1, %c0_2] : memref<256x128xbf16, #tpu.memory_space<vmem>>, vector<256x128xbf16>
    %cst = arith.constant dense<0.000000e+00> : vector<8x128xf32>
    %2 = tpu.matmul %0, %1, %cst {dimension_numbers = #tpu.dot_dimension_numbers<[1], [0], [0], [1], [0, 0, 1, 1], [], []>} : vector<8x256xbf16>, vector<256x128xbf16>, vector<8x128xf32> -> vector<8x128xf32>
    %c0_3 = arith.constant 0 : index
    %c0_4 = arith.constant 0 : index
    %3 = vector.load %arg3[%c0_3, %c0_4] : memref<1x128xf32, #tpu.memory_space<vmem>>, vector<1x128xf32>
    %4 = vector.broadcast %3 : vector<1x128xf32> to vector<8x128xf32>
    %5 = arith.addf %2, %4 : vector<8x128xf32>
    %cst_5 = arith.constant 0.000000e+00 : f32
    %6 = vector.broadcast %cst_5 : f32 to vector<8x128xf32>
    %7 = arith.maximumf %5, %6 : vector<8x128xf32>
    %8 = arith.truncf %7 : vector<8x128xf32> to vector<8x128xbf16>
    %c0_6 = arith.constant 0 : index
    %c0_7 = arith.constant 0 : index
    %9 = vector.load %arg4[%c0_6, %c0_7] : memref<128x128xbf16, #tpu.memory_space<vmem>>, vector<128x128xbf16>
    %cst_8 = arith.constant dense<0.000000e+00> : vector<8x128xf32>
    %10 = tpu.matmul %8, %9, %cst_8 {dimension_numbers = #tpu.dot_dimension_numbers<[1], [0], [0], [1], [0, 0, 1, 1], [], []>} : vector<8x128xbf16>, vector<128x128xbf16>, vector<8x128xf32> -> vector<8x128xf32>
    %c0_9 = arith.constant 0 : index
    %c0_10 = arith.constant 0 : index
    %11 = vector.load %arg5[%c0_9, %c0_10] : memref<1x128xf32, #tpu.memory_space<vmem>>, vector<1x128xf32>
    %12 = vector.broadcast %11 : vector<1x128xf32> to vector<8x128xf32>
    %13 = arith.addf %10, %12 : vector<8x128xf32>
    %cst_11 = arith.constant 0.000000e+00 : f32
    %14 = vector.broadcast %cst_11 : f32 to vector<8x128xf32>
    %15 = arith.maximumf %13, %14 : vector<8x128xf32>
    %16 = arith.truncf %15 : vector<8x128xf32> to vector<8x128xbf16>
    %c0_12 = arith.constant 0 : index
    %c0_13 = arith.constant 0 : index
    %17 = vector.load %arg6[%c0_12, %c0_13] : memref<128x128xbf16, #tpu.memory_space<vmem>>, vector<128x128xbf16>
    %cst_14 = arith.constant dense<0.000000e+00> : vector<8x128xf32>
    %18 = tpu.matmul %16, %17, %cst_14 {dimension_numbers = #tpu.dot_dimension_numbers<[1], [0], [0], [1], [0, 0, 1, 1], [], []>} : vector<8x128xbf16>, vector<128x128xbf16>, vector<8x128xf32> -> vector<8x128xf32>
    %c0_15 = arith.constant 0 : index
    %c0_16 = arith.constant 0 : index
    %19 = vector.load %arg7[%c0_15, %c0_16] : memref<1x128xf32, #tpu.memory_space<vmem>>, vector<1x128xf32>
    %20 = vector.broadcast %19 : vector<1x128xf32> to vector<8x128xf32>
    %21 = arith.addf %18, %20 : vector<8x128xf32>
    %c0_17 = arith.constant 0 : index
    %c0_18 = arith.constant 0 : index
    %22 = vector.load %arg8[%c0_17, %c0_18] : memref<8x128xf32, #tpu.memory_space<vmem>>, vector<8x128xf32>
    tpu.vector_store %arg8[%c0_17, %c0_18], %21 {strides = array<i32>} : memref<8x128xf32, #tpu.memory_space<vmem>>, vector<8x128xf32>,
    return
  }
  func.func @transform_0(%arg0: i32) -> (i32, i32) {
    %c0_i32 = arith.constant 0 : i32
    %c0_i32_0 = arith.constant 0 : i32
    return %arg0, %c0_i32 : i32, i32
  }
  func.func @transform_1(%arg0: i32) -> (i32, i32) {
    %c0_i32 = arith.constant 0 : i32
    %c0_i32_0 = arith.constant 0 : i32
    %c0_i32_1 = arith.constant 0 : i32
    return %c0_i32, %c0_i32_0 : i32, i32
  }
  func.func @transform_2(%arg0: i32) -> (i32, i32) {
    %c0_i32 = arith.constant 0 : i32
    %c0_i32_0 = arith.constant 0 : i32
    %c0_i32_1 = arith.constant 0 : i32
    return %c0_i32, %c0_i32_0 : i32, i32
  }
  func.func @transform_3(%arg0: i32) -> (i32, i32) {
    %c0_i32 = arith.constant 0 : i32
    %c0_i32_0 = arith.constant 0 : i32
    %c0_i32_1 = arith.constant 0 : i32
    return %c0_i32, %c0_i32_0 : i32, i32
  }
  func.func @transform_4(%arg0: i32) -> (i32, i32) {
    %c0_i32 = arith.constant 0 : i32
    %c0_i32_0 = arith.constant 0 : i32
    %c0_i32_1 = arith.constant 0 : i32
    return %c0_i32, %c0_i32_0 : i32, i32
  }
  func.func @transform_5(%arg0: i32) -> (i32, i32) {
    %c0_i32 = arith.constant 0 : i32
    %c0_i32_0 = arith.constant 0 : i32
    %c0_i32_1 = arith.constant 0 : i32
    return %c0_i32, %c0_i32_0 : i32, i32
  }
  func.func @transform_6(%arg0: i32) -> (i32, i32) {
    %c0_i32 = arith.constant 0 : i32
    %c0_i32_0 = arith.constant 0 : i32
    %c0_i32_1 = arith.constant 0 : i32
    return %c0_i32, %c0_i32_0 : i32, i32
  }
  func.func @transform_7(%arg0: i32) -> (i32, i32) {
    %c0_i32 = arith.constant 0 : i32
    %c0_i32_0 = arith.constant 0 : i32
    return %arg0, %c0_i32 : i32, i32
  }
}

</mosaic_0001>

<bundles_post_ra>
// kernel: _lambda_.1
= control target key start
LH: loop header
LB: loop body
LE: loop exit
PB: predicated region body
PF: predicated region fallthrough
CT: control target
= control target key end

     0   :  { %12 = vsyncpa [#allocation3], 0  ;;  %s803_s0 = inlined_call_operand.vmem [shape: bf16[8,256], index: 0, kind: input, shape index: {}]   ;;  %s804_s1 = inlined_call_operand.hbm [shape: bf16[256,128], index: 1, kind: input, shape index: {}]   ;;  %s805_s2 = inlined_call_operand.vmem [shape: f32[1,128], index: 2, kind: input, shape index: {}]   ;;  %s806_s3 = inlined_call_operand.hbm [shape: bf16[128,128], index: 3, kind: input, shape index: {}]   ;;  %s807_s4 = inlined_call_operand.vmem [shape: f32[1,128], index: 4, kind: input, shape index: {}]   ;;  %s808_s5 = inlined_call_operand.vmem [shape: bf16[128,128], index: 5, kind: input, shape index: {}]   ;;  %s809_s6 = inlined_call_operand.vmem [shape: f32[1,128], index: 6, kind: input, shape index: {}]   ;;  %s810_s7 = inlined_call_operand.vmem [shape: f32[8,128], index: 7, kind: output, shape index: {}]  }
   0x1   :  { %13 = vsyncpa [#allocation5], 0  ;;  %s676_s24 = smov [#allocation2]   ;;  %s628_s28 = scalar_lea.hbm %s804_s1, 2048 }
   0x2   :  { %s21_s25 = sshll.u32 %s676_s24, 4  ;;  %p629_p0 = scmp.ne.s32.totalorder %s804_s1, %s628_s28  ;;  %s22_s25 = int_to_ptr.vmem [resolvable:$true] %s21_s25 }
   0x3   :  { %p632_p1 = scmp.lt.u32.totalorder %s628_s28, %s804_s1 }
   0x5   :  { %p634_p2 = pnand %p632_p1, %p629_p0 }
   0x7   :  { %637 = shalt.err (!%p634_p2)
}
   0x8   :  { %s638_s10 = scalar_lea.vmem %s22_s25, 2048  ;;  %p643_p4 = scmp.lt.s32.totalorder %s22_s25, %s22_s25 }
   0x9   :  { %p639_p3 = scmp.ne.s32.totalorder %s22_s25, %s638_s10  ;;  %p644_p5 = scmp.lt.s32.totalorder %s638_s10, %s638_s10 }
   0xb   :  { %p645_p6 = por %p644_p5, %p643_p4 }
   0xd   :  { %p646_p7 = pnand %p645_p6, %p639_p3 }
   0xf   :  { %649 = shalt.err (!%p646_p7)
}
  0x10   :  { %s677_s11 = smov 64   ;;  %s678_s12 = smov 4  }
  0x11   :  { %27 = dma.hbm_to_vmem [thread:$0]  %s804_s1, 2048, %s22_s25, [#allocation3], %s677_s11, %s677_s11, %s678_s12  }
  0x12   :  { %s679_s15 = smov [#allocation4]   ;;  %s650_s19 = scalar_lea.hbm %s806_s3, 1024 }
  0x13   :  { %s35_s16 = sshll.u32 %s679_s15, 4  ;;  %p651_p8 = scmp.ne.s32.totalorder %s806_s3, %s650_s19  ;;  %s36_s16 = int_to_ptr.vmem [resolvable:$true] %s35_s16 }
  0x14   :  { %p654_p9 = scmp.lt.u32.totalorder %s650_s19, %s806_s3 }
  0x16   :  { %p656_p10 = pnand %p654_p9, %p651_p8 }
  0x18   :  { %659 = shalt.err (!%p656_p10)
}
  0x19   :  { %s660_s24 = scalar_lea.vmem %s36_s16, 1024  ;;  %p665_p12 = scmp.lt.s32.totalorder %s36_s16, %s36_s16 }
  0x1a   :  { %p661_p11 = scmp.ne.s32.totalorder %s36_s16, %s660_s24  ;;  %p666_p13 = scmp.lt.s32.totalorder %s660_s24, %s660_s24 }
  0x1c   :  { %p667_p0 = por %p666_p13, %p665_p12 }
  0x1e   :  { %p668_p1 = pnand %p667_p0, %p661_p11 }
  0x20   :  { %671 = shalt.err (!%p668_p1)
}
  0x21   :  { %41 = dma.hbm_to_vmem [thread:$0]  %s806_s3, 1024, %s36_s16, [#allocation5], %s677_s11, %s677_s11, %s678_s12  }
  0x22   :  { %672 = dma.done.wait [#allocation3], 2048  }
  0x23   :  { %673 = vsyncadd [#allocation3], 4294965248 }
  0x24   :  { %674 = dma.done.wait [#allocation5], 1024  }
  0x25   :  { %675 = vsyncadd [#allocation5], 4294966272  ;;  %v680_v0 = vmov 0.0   ;;  %v594_v1 = vld [vmem:[#allocation2 + $0x40] sm:$0xff]   ;;  %v596_v3 = vld [vmem:[#allocation2 + $0x48] sm:$0xff]   ;;  %vm681_vm0 = vmmov 0  }
  0x26   :  { %548 = vmatprep.subr.bf16.mxu1 %v680_v0  ;;  %v595_v2 = vld [vmem:[#allocation2] sm:$0xff]   ;;  %508 = vmatprep.subr.bf16.mxu0 %v594_v1  ;;  %v597_v4 = vld [vmem:[#allocation2 + $0x8] sm:$0xff]   ;;  %v598_v5 = vld [vmem:[#allocation2 + $0x50] sm:$0xff]  }
  0x27   :  { %509 = vmatpush3.bf16.msra.mxu0 %v595_v2  ;;  %v599_v6 = vld [vmem:[#allocation2 + $0x10] sm:$0xff]   ;;  %v600_v7 = vld [vmem:[#allocation2 + $0x58] sm:$0xff]   ;;  %v602_v9 = vld [vmem:[#allocation2 + $0x60] sm:$0xff]   ;;  %564 = vmatprep.mubr.msk.bf16.mxu1 %vm681_vm0, %v680_v0 }
  0x28   :  { %510 = vmatprep.subr.bf16.mxu0 %v596_v3  ;;  %v601_v8 = vld [vmem:[#allocation2 + $0x18] sm:$0xff]   ;;  %v603_v10 = vld [vmem:[#allocation2 + $0x20] sm:$0xff]   ;;  %v604_v11 = vld [vmem:[#allocation2 + $0x68] sm:$0xff]  }
  0x29   :  { %v55_v12 = vld [vmem:[%s803_s0] sm:$0xff]  ;;  %v605_v15 = vld [vmem:[#allocation2 + $0x28] sm:$0xff]   ;;  %v606_v16 = vld [vmem:[#allocation2 + $0x70] sm:$0xff]  }
  0x2a   :  { %v473_v13 = vcombine.high %v55_v12, %v55_v12  ;;  %v612_v14 = vld [vmem:[#allocation4] sm:$0xff]   ;;  %v613_v17 = vld [vmem:[#allocation4 + $0x8] sm:$0xff]   ;;  %v607_v18 = vld [vmem:[#allocation2 + $0x30] sm:$0xff]   ;;  %v472_v23 = vcombine.low %v55_v12, %v55_v12 }
  0x2b   :  { %511 = vmatpush3.bf16.msra.mxu0 %v597_v4  ;;  %549 = vmatpush3.bf16.msra.mxu1 %v612_v14  ;;  %v608_v19 = vld [vmem:[#allocation2 + $0x78] sm:$0xff]   ;;  %v614_v20 = vld [vmem:[#allocation4 + $0x10] sm:$0xff]   ;;  %v616_v24 = vld [vmem:[#allocation4 + $0x20] sm:$0xff]  }
  0x2c   :  { %512 = vmatprep.subr.bf16.mxu0 %v598_v5  ;;  %230 = vmatprep.mubr.bf16.mxu0 %v473_v13  ;;  %v609_v21 = vld [vmem:[#allocation2 + $0x38] sm:$0xff]   ;;  %v617_v25 = vld [vmem:[#allocation4 + $0x28] sm:$0xff]   ;;  %v618_v26 = vld [vmem:[#allocation4 + $0x30] sm:$0xff]  }
  0x2d   :  { %550 = vmatprep.subr.bf16.mxu1 %v680_v0  ;;  %v615_v22 = vld [vmem:[#allocation4 + $0x18] sm:$0xff]   ;;  %v620_v28 = vld [vmem:[%s808_s5] sm:$0xff]   ;;  %v621_v29 = vld [vmem:[%s808_s5 + $0x8] sm:$0xff]  }
  0x2e   :  { %v619_v27 = vld [vmem:[#allocation4 + $0x38] sm:$0xff]   ;;  %v622_v30 = vld [vmem:[%s808_s5 + $0x10] sm:$0xff]   ;;  %v624_v32 = vld [vmem:[%s808_s5 + $0x20] sm:$0xff]  }
  0x2f   :  { %513 = vmatpush3.bf16.msra.mxu0 %v599_v6  ;;  %551 = vmatpush3.bf16.msra.mxu1 %v613_v17  ;;  %v623_v31 = vld [vmem:[%s808_s5 + $0x18] sm:$0xff]   ;;  %v625_v33 = vld [vmem:[%s808_s5 + $0x28] sm:$0xff]   ;;  %v471_v35 = vld [vmem:[%s805_s2] ss:$0 sm:$0xff] }
  0x30   :  { %514 = vmatprep.subr.bf16.mxu0 %v600_v7  ;;  %552 = vmatprep.subr.bf16.mxu1 %v680_v0  ;;  %v626_v43 = vld [vmem:[%s808_s5 + $0x30] sm:$0xff]   ;;  %v627_v44 = vld [vmem:[%s808_s5 + $0x38] sm:$0xff]   ;;  %v490_v45 = vld [vmem:[%s807_s4] ss:$0 sm:$0xff] }
  0x31   :  { %v499_v53 = vld [vmem:[%s809_s6] ss:$0 sm:$0xff] }
  0x33   :  { %515 = vmatpush3.bf16.msra.mxu0 %v601_v8  ;;  %553 = vmatpush3.bf16.msra.mxu1 %v614_v20 }
  0x34   :  { %516 = vmatprep.subr.bf16.mxu0 %v602_v9  ;;  %554 = vmatprep.subr.bf16.mxu1 %v680_v0 }
  0x37   :  { %517 = vmatpush3.bf16.msra.mxu0 %v603_v10  ;;  %555 = vmatpush3.bf16.msra.mxu1 %v615_v22 }
  0x38   :  { %518 = vmatprep.subr.bf16.mxu0 %v604_v11  ;;  %556 = vmatprep.subr.bf16.mxu1 %v680_v0 }
  0x3b   :  { %519 = vmatpush3.bf16.msra.mxu0 %v605_v15  ;;  %557 = vmatpush3.bf16.msra.mxu1 %v616_v24 }
  0x3c   :  { %520 = vmatprep.subr.bf16.mxu0 %v606_v16  ;;  %558 = vmatprep.subr.bf16.mxu1 %v680_v0 }
  0x3f   :  { %521 = vmatpush3.bf16.msra.mxu0 %v607_v18  ;;  %559 = vmatpush3.bf16.msra.mxu1 %v617_v25 }
  0x40   :  { %522 = vmatprep.subr.bf16.mxu0 %v608_v19  ;;  %560 = vmatprep.subr.bf16.mxu1 %v680_v0 }
  0x43   :  { %523 = vmatpush3.bf16.msra.mxu0 %v609_v21  ;;  %561 = vmatpush3.bf16.msra.mxu1 %v618_v26 }
  0x44   :  { %568 = vmatprep.subr.bf16.mxu0 %v680_v0  ;;  %562 = vmatprep.subr.bf16.mxu1 %v680_v0 }
  0x46   :  { %231 = vmatmul.mubr.bf16.vlgmr.msra.gmra.mrb[0].mxu0 %v472_v23 }
  0x47   :  { %563 = vmatpush3.bf16.msra.mxu1 %v619_v27  ;;  %584 = vmatprep.mubr.msk.bf16.mxu0 %vm681_vm0, %v680_v0 }
  0x48   :  { %569 = vmatpush3.bf16.msra.mxu0 %v620_v28 }
  0x49   :  { %570 = vmatprep.subr.bf16.mxu0 %v680_v0 }
  0x4c   :  { %571 = vmatpush3.bf16.msra.mxu0 %v621_v29 }
  0x4d   :  { %572 = vmatprep.subr.bf16.mxu0 %v680_v0 }
  0x50   :  { %573 = vmatpush3.bf16.msra.mxu0 %v622_v30 }
  0x51   :  { %574 = vmatprep.subr.bf16.mxu0 %v680_v0 }
  0x54   :  { %575 = vmatpush3.bf16.msra.mxu0 %v623_v31 }
  0x55   :  { %576 = vmatprep.subr.bf16.mxu0 %v680_v0 }
  0x58   :  { %577 = vmatpush3.bf16.msra.mxu0 %v624_v32 }
  0x59   :  { %578 = vmatprep.subr.bf16.mxu0 %v680_v0 }
  0x5c   :  { %579 = vmatpush3.bf16.msra.mxu0 %v625_v33 }
  0x5d   :  { %580 = vmatprep.subr.bf16.mxu0 %v680_v0 }
  0x60   :  { %581 = vmatpush3.bf16.msra.mxu0 %v626_v43 }
  0x61   :  { %582 = vmatprep.subr.bf16.mxu0 %v680_v0 }
  0x64   :  { %583 = vmatpush3.bf16.msra.mxu0 %v627_v44 }
 0x119   :  { %v524_v34 = vpop.f32.mrb[0].mxu0 }
 0x11a   :  { %v525_v36 = vpop.f32.mrb[1].mxu0 }
 0x11b   :  { %v526_v37 = vadd.f32 %v525_v36, %v524_v34  ;;  %v527_v38 = vpop.f32.mrb[2].mxu0 }
 0x11c   :  { %v528_v39 = vpop.f32.mrb[3].mxu0 }
 0x11d   :  { %v233_v40 = vadd.f32 %v526_v37, %v471_v35 }
 0x11f   :  { %v238_v41 = vmax.f32 %v233_v40, 0.0 }
 0x121   :  { %v239_v42 = vpack.c.bf16 %v238_v41, %v238_v41 }
 0x123   :  { %565 = vmatmul.mubr.bf16.vlgmr.msra.gmra.mrb[0].mxu1 %v239_v42 }
 0x1f6   :  { %v345_v46 = vpop.f32.mrb[0].mxu1 }
 0x1f7   :  { %v346_v47 = vadd.f32 %v490_v45, %v345_v46  ;;  %v566_v48 = vpop.f32.mrb[1].mxu1 }
 0x1f8   :  { %v348_v49 = vpop.f32.mrb[2].mxu1 }
 0x1f9   :  { %v351_v50 = vmax.f32 %v346_v47, 0.0  ;;  %v567_v51 = vpop.f32.mrb[3].mxu1 }
 0x1fb   :  { %v352_v52 = vpack.c.bf16 %v351_v50, %v351_v50 }
 0x1fd   :  { %585 = vmatmul.mubr.bf16.vlgmr.msra.gmra.mrb[4].mxu0 %v352_v52 }
 0x2d0   :  { %v458_v54 = vpop.f32.mrb[4].mxu0 }
 0x2d1   :  { %v459_v55 = vadd.f32 %v499_v53, %v458_v54  ;;  %v586_v56 = vpop.f32.mrb[5].mxu0 }
 0x2d2   :  { %v461_v57 = vpop.f32.mrb[6].mxu0 }
 0x2d3   :  { %464 = vst [vmem:[%s810_s7] sm:$0xff] %v459_v55  ;;  %v587_v58 = vpop.f32.mrb[7].mxu0 }
 0x2d4   :  { %469 = vsyncpa [#allocation3], 1 }
 0x2d5   :  { %470 = vsyncpa [#allocation5], 1 }

</bundles_post_ra>
